<compile_context>
chip_gen: v6e
topology: v6e:2x2x1
jax: 0.10.0
libtpu: 0.0.40
codegen_flags: <defaults>
</compile_context>

<pallas_src>
import jax
import jax.numpy as jnp
from jax.experimental import pallas as pl
from jax.experimental.pallas import tpu as pltpu


def _round_up(a, b):
    return (a + b - 1) // b * b


def _cdiv(a, b):
    return -(-a // b)


def _layer_norm(y, gamma, beta, eps=1e-6):
    mean = jnp.mean(y, axis=-1, keepdims=True)
    centered = y - mean
    var = jnp.mean(centered * centered, axis=-1, keepdims=True)
    y = centered * jax.lax.rsqrt(var + eps)
    return y * gamma + beta


# ----------------------------------------------------------------------------
# Kernels
# ----------------------------------------------------------------------------
def ffn_kernel_single(x_ref, w1_ref, b1_ref, w2_ref, b2_ref, g_ref, beta_ref,
                      o_ref):
    """Whole hidden dim resident: no accumulator scratch, no pl.when."""
    x_f32 = x_ref[...].astype(jnp.float32)
    x_mxu = x_ref[...].astype(jnp.bfloat16)

    # w_1: Linear(d_model -> d_hid) + ReLU  (bf16 operands, f32 accumulate)
    h = jnp.dot(x_mxu, w1_ref[...], preferred_element_type=jnp.float32)
    h = jnp.maximum(h + b1_ref[...].astype(jnp.float32), 0.0)

    # w_2: Linear(d_hid -> d_model)
    y = jnp.dot(h.astype(jnp.bfloat16), w2_ref[...],
                preferred_element_type=jnp.float32)
    y = y + b2_ref[...].astype(jnp.float32) + x_f32

    # TODO(synk): nn.Dropout(p=0.1) in training mode would need pltpu.prng_*;
    # inference behaviour (identity) is reproduced here.

    y = _layer_norm(y, g_ref[...].astype(jnp.float32),
                    beta_ref[...].astype(jnp.float32))
    o_ref[...] = y.astype(o_ref.dtype)


def ffn_kernel_chunked(x_ref, w1_ref, b1_ref, w2_ref, b2_ref, g_ref, beta_ref,
                       o_ref, acc_ref):
    """Hidden dim tiled along the trailing 'arbitrary' grid axis."""
    k = pl.program_id(1)
    nk = pl.num_programs(1)

    x_f32 = x_ref[...].astype(jnp.float32)

    @pl.when(k == 0)
    def _():
        # Fold residual + output bias into the accumulator init so the serial
        # epilogue after the last matmul has no extra VPU adds.
        acc_ref[...] = x_f32 + b2_ref[...].astype(jnp.float32)

    x_mxu = x_ref[...].astype(jnp.bfloat16)
    h = jnp.dot(x_mxu, w1_ref[...], preferred_element_type=jnp.float32)
    h = jnp.maximum(h + b1_ref[...].astype(jnp.float32), 0.0)
    acc_ref[...] += jnp.dot(h.astype(jnp.bfloat16), w2_ref[...],
                            preferred_element_type=jnp.float32)

    # TODO(synk): dropout (training mode) omitted -> inference identity.

    @pl.when(k == nk - 1)
    def _():
        y = _layer_norm(acc_ref[...], g_ref[...].astype(jnp.float32),
                        beta_ref[...].astype(jnp.float32))
        o_ref[...] = y.astype(o_ref.dtype)


# ----------------------------------------------------------------------------
# Wrapper
# ----------------------------------------------------------------------------
def _tpu_vmem_capacity():
    try:
        return int(pltpu.get_tpu_info().vmem_capacity_bytes)
    except Exception:
        return 64 * 1024 * 1024  # conservative (v7x per-core VMEM)


def _pick_tile_h(H, max_tile):
    """Largest hidden chunk <= max_tile that divides H (prefer mult. of 128)."""
    if H <= max_tile:
        return H, H
    t = (min(max_tile, H) // 128) * 128
    while t >= 128:
        if H % t == 0:
            return t, H
        t -= 128
    # Fallback: zero-pad the hidden axis (padded columns contribute nothing).
    return max_tile, _round_up(H, max_tile)


def poswise_ffn(x, w1, b1, w2, b2, gamma, beta, *, tile_rows=None, tile_h=None):
    """x: (batch, seq, d_model). w1: (d_model, d_hid), w2: (d_hid, d_model)."""
    B, S, D = x.shape
    H = w1.shape[1]
    n_rows = B * S
    x_bytes = jnp.dtype(x.dtype).itemsize
    w_bytes = 2  # weights are streamed to the MXU as bf16

    vmem_cap = _tpu_vmem_capacity()
    budget = vmem_cap - 8 * 1024 * 1024  # headroom for compiler scratch

    # Generation-aware defaults (bigger row tiles amortize weight streaming;
    # roofline crossover needs ~300-650 FLOP/byte depending on generation).
    big_vmem = vmem_cap >= 96 * 1024 * 1024  # v5e / v6e (128 MiB)
    if tile_rows is None:
        tile_rows = 1024 if big_vmem else 512
    if tile_h is None:
        tile_h = 1024 if big_vmem else 512

    tile_h_eff, h_pad = _pick_tile_h(H, tile_h)

    def working_set(tr, th):
        return (4 * tr * D * x_bytes            # x + out tiles, double buffered
                + 4 * D * th * w_bytes          # w1 + w2 chunks, double buffered
                + 2 * (th + 3 * D) * 4          # biases / LN params
                + tr * D * 4                    # f32 accumulator scratch
                + tr * th * 4)                  # hidden activation temporary

    # Row tile choice: minimal padding, and >= 2 tiles when big enough so the
    # 'parallel' axis can split across v7x's two TensorCores.
    n8 = _round_up(n_rows, 8)
    if n8 > tile_rows:
        n_tiles = max(2, _cdiv(n8, tile_rows))
    elif n8 >= 512:
        n_tiles = 2
    else:
        n_tiles = 1
    tile_rows_eff = _round_up(_cdiv(n8, n_tiles), 8)

    # Shrink to the VMEM budget (rows first, then hidden chunk).
    while working_set(tile_rows_eff, tile_h_eff) > budget and tile_rows_eff > 64:
        tile_rows_eff = max(64, _round_up(tile_rows_eff // 2, 8))
    while (working_set(tile_rows_eff, tile_h_eff) > budget
           and tile_h_eff > 256 and tile_h_eff % 256 == 0):
        tile_h_eff //= 2

    n_rows_pad = _round_up(n8, tile_rows_eff)
    n_row_tiles = n_rows_pad // tile_rows_eff
    n_h_tiles = h_pad // tile_h_eff

    vmem_limit = int(min(budget,
                         working_set(tile_rows_eff, tile_h_eff) + 16 * 1024 * 1024))
    vmem_limit = max(vmem_limit, 16 * 1024 * 1024)

    # Pad operands (padded rows are sliced off; padded hidden cols are zero).
    x2d = x.reshape(n_rows, D)
    if n_rows_pad != n_rows:
        x2d = jnp.pad(x2d, ((0, n_rows_pad - n_rows), (0, 0)))
    if h_pad != H:
        w1 = jnp.pad(w1, ((0, 0), (0, h_pad - H)))
        b1 = jnp.pad(b1, (0, h_pad - H))
        w2 = jnp.pad(w2, ((0, h_pad - H), (0, 0)))

    # bf16 MXU operands; small params kept in f32 as (1, dim) rows.
    w1_bf = w1.astype(jnp.bfloat16)
    w2_bf = w2.astype(jnp.bfloat16)
    b1_2d = b1.reshape(1, h_pad).astype(jnp.float32)
    b2_2d = b2.reshape(1, D).astype(jnp.float32)
    g_2d = gamma.reshape(1, D).astype(jnp.float32)
    be_2d = beta.reshape(1, D).astype(jnp.float32)

    # Advisory cost estimate: weights are re-read once per row tile.
    cost = pl.CostEstimate(
        flops=2 * 2 * n_rows_pad * D * h_pad,
        transcendentals=0,
        bytes_accessed=(2 * n_rows_pad * D * x_bytes
                        + n_row_tiles * (2 * D * h_pad * w_bytes + h_pad * 4)
                        + 3 * D * 4),
    )

    out_shape = jax.ShapeDtypeStruct((n_rows_pad, D), x.dtype)

    if n_h_tiles == 1:
        # Whole hidden dim resident: skip the accumulator scratch entirely.
        out2d = pl.pallas_call(
            ffn_kernel_single,
            out_shape=out_shape,
            grid_spec=pltpu.PrefetchScalarGridSpec(
                num_scalar_prefetch=0,
                grid=(n_row_tiles,),
                in_specs=[
                    pl.BlockSpec((tile_rows_eff, D), lambda i: (i, 0)),
                    pl.BlockSpec((D, h_pad), lambda i: (0, 0)),
                    pl.BlockSpec((1, h_pad), lambda i: (0, 0)),
                    pl.BlockSpec((h_pad, D), lambda i: (0, 0)),
                    pl.BlockSpec((1, D), lambda i: (0, 0)),
                    pl.BlockSpec((1, D), lambda i: (0, 0)),
                    pl.BlockSpec((1, D), lambda i: (0, 0)),
                ],
                out_specs=pl.BlockSpec((tile_rows_eff, D), lambda i: (i, 0)),
            ),
            compiler_params=pltpu.CompilerParams(
                dimension_semantics=("parallel",),
                vmem_limit_bytes=vmem_limit,
            ),
            cost_estimate=cost,
        )(x2d, w1_bf, b1_2d, w2_bf, b2_2d, g_2d, be_2d)
    else:
        out2d = pl.pallas_call(
            ffn_kernel_chunked,
            out_shape=out_shape,
            grid_spec=pltpu.PrefetchScalarGridSpec(
                num_scalar_prefetch=0,
                grid=(n_row_tiles, n_h_tiles),
                in_specs=[
                    pl.BlockSpec((tile_rows_eff, D), lambda i, k: (i, 0)),
                    pl.BlockSpec((D, tile_h_eff), lambda i, k: (0, k)),
                    pl.BlockSpec((1, tile_h_eff), lambda i, k: (0, k)),
                    pl.BlockSpec((tile_h_eff, D), lambda i, k: (k, 0)),
                    pl.BlockSpec((1, D), lambda i, k: (0, 0)),
                    pl.BlockSpec((1, D), lambda i, k: (0, 0)),
                    pl.BlockSpec((1, D), lambda i, k: (0, 0)),
                ],
                out_specs=pl.BlockSpec((tile_rows_eff, D), lambda i, k: (i, 0)),
                scratch_shapes=[pltpu.VMEM((tile_rows_eff, D), jnp.float32)],
            ),
            compiler_params=pltpu.CompilerParams(
                dimension_semantics=("parallel", "arbitrary"),
                vmem_limit_bytes=vmem_limit,
            ),
            cost_estimate=cost,
        )(x2d, w1_bf, b1_2d, w2_bf, b2_2d, g_2d, be_2d)

    return out2d[:n_rows].reshape(B, S, D)


# ----------------------------------------------------------------------------
# Reference + self-test
# ----------------------------------------------------------------------------
def reference_ffn(x, w1, b1, w2, b2, gamma, beta):
    h = jnp.maximum(x @ w1 + b1, 0.0)
    y = h @ w2 + b2
    y = y + x
    mean = jnp.mean(y, axis=-1, keepdims=True)
    var = jnp.mean((y - mean) ** 2, axis=-1, keepdims=True)
    y = (y - mean) / jnp.sqrt(var + 1e-6)
    return y * gamma + beta


def _make_inputs(key, B, S, D, H):
    kx, kw1, kb1, kw2, kb2 = jax.random.split(key, 5)
    x = jax.random.normal(kx, (B, S, D), dtype=jnp.float32)
    # PyTorch stores Linear weights as (out, in); kept here as (in, out) so the
    # kernel multiplies directly on the MXU.
    w1 = jax.random.normal(kw1, (D, H), dtype=jnp.float32) * (1.0 / D) ** 0.5
    b1 = jax.random.normal(kb1, (H,), dtype=jnp.float32) * 0.01
    w2 = jax.random.normal(kw2, (H, D), dtype=jnp.float32) * (1.0 / H) ** 0.5
    b2 = jax.random.normal(kb2, (D,), dtype=jnp.float32) * 0.01
    gamma = jnp.ones((D,), dtype=jnp.float32)   # LayerNorm weight init
    beta = jnp.zeros((D,), dtype=jnp.float32)   # LayerNorm bias init
    return x, w1, b1, w2, b2, gamma, beta


if __name__ == "__main__":
    key = jax.random.PRNGKey(0)
    k1, k2 = jax.random.split(key)

    # Test 1: small shapes consistent with the module (d_model/d_hid shrunk);
    # exercises the single-hidden-chunk kernel path.
    x, w1, b1, w2, b2, g, be = _make_inputs(k1, B=2, S=8, D=32, H=64)
    out = jax.block_until_ready(poswise_ffn(x, w1, b1, w2, b2, g, be))
    ref = reference_ffn(x, w1, b1, w2, b2, g, be)
    assert out.shape == x.shape and out.dtype == x.dtype
    # bf16 MXU operands -> looser tolerance than pure f32.
    assert jnp.allclose(out, ref, atol=5e-2, rtol=5e-2)

    # Test 2: 128-multiple dims + forced hidden tiling (tile_h=128 -> 2 chunks)
    # to exercise the accumulator / pl.when path with lane-dense stores.
    x, w1, b1, w2, b2, g, be = _make_inputs(k2, B=2, S=16, D=128, H=256)
    out = jax.block_until_ready(poswise_ffn(x, w1, b1, w2, b2, g, be, tile_h=128))
    ref = reference_ffn(x, w1, b1, w2, b2, g, be)
    assert out.shape == x.shape and out.dtype == x.dtype
    assert jnp.allclose(out, ref, atol=5e-2, rtol=5e-2)

    print("KERNEL_OK")
</pallas_src>

<mosaic_0001>
module attributes {stable_mosaic.version = 11 : i64} {
  func.func @ffn_kernel_single(%arg0: i32, %arg1: memref<16x32xf32, #tpu.memory_space<vmem>>, %arg2: memref<32x64xbf16, #tpu.memory_space<vmem>>, %arg3: memref<1x64xf32, #tpu.memory_space<vmem>>, %arg4: memref<64x32xbf16, #tpu.memory_space<vmem>>, %arg5: memref<1x32xf32, #tpu.memory_space<vmem>>, %arg6: memref<1x32xf32, #tpu.memory_space<vmem>>, %arg7: memref<1x32xf32, #tpu.memory_space<vmem>>, %arg8: memref<16x32xf32, #tpu.memory_space<vmem>>) attributes {dimension_semantics = [#tpu.dimension_semantics<parallel>], iteration_bounds = array<i64: 1>, scalar_prefetch = 0 : i64, scratch_operands = 0 : i64, tpu.core_type = #tpu.core_type<tc>, window_params = [{transform_indices = @transform_0, window_bounds = array<i64: 16, 32>}, {pipeline_mode = #tpu.pipeline_mode<synchronous>, transform_indices = @transform_1, window_bounds = array<i64: 32, 64>}, {pipeline_mode = #tpu.pipeline_mode<synchronous>, transform_indices = @transform_2, window_bounds = array<i64: 1, 64>}, {pipeline_mode = #tpu.pipeline_mode<synchronous>, transform_indices = @transform_3, window_bounds = array<i64: 64, 32>}, {pipeline_mode = #tpu.pipeline_mode<synchronous>, transform_indices = @transform_4, window_bounds = array<i64: 1, 32>}, {pipeline_mode = #tpu.pipeline_mode<synchronous>, transform_indices = @transform_5, window_bounds = array<i64: 1, 32>}, {pipeline_mode = #tpu.pipeline_mode<synchronous>, transform_indices = @transform_6, window_bounds = array<i64: 1, 32>}, {transform_indices = @transform_7, window_bounds = array<i64: 16, 32>}]} {
    %c0 = arith.constant 0 : index
    %c0_0 = arith.constant 0 : index
    %0 = vector.load %arg1[%c0, %c0_0] : memref<16x32xf32, #tpu.memory_space<vmem>>, vector<16x32xf32>
    %c0_1 = arith.constant 0 : index
    %c0_2 = arith.constant 0 : index
    %1 = vector.load %arg1[%c0_1, %c0_2] : memref<16x32xf32, #tpu.memory_space<vmem>>, vector<16x32xf32>
    %2 = arith.truncf %1 : vector<16x32xf32> to vector<16x32xbf16>
    %c0_3 = arith.constant 0 : index
    %c0_4 = arith.constant 0 : index
    %3 = vector.load %arg2[%c0_3, %c0_4] : memref<32x64xbf16, #tpu.memory_space<vmem>>, vector<32x64xbf16>
    %cst = arith.constant dense<0.000000e+00> : vector<16x64xf32>
    %4 = tpu.matmul %2, %3, %cst {dimension_numbers = #tpu.dot_dimension_numbers<[1], [0], [0], [1], [0, 0, 1, 1], [], []>} : vector<16x32xbf16>, vector<32x64xbf16>, vector<16x64xf32> -> vector<16x64xf32>
    %c0_5 = arith.constant 0 : index
    %c0_6 = arith.constant 0 : index
    %5 = vector.load %arg3[%c0_5, %c0_6] : memref<1x64xf32, #tpu.memory_space<vmem>>, vector<1x64xf32>
    %6 = vector.broadcast %5 : vector<1x64xf32> to vector<16x64xf32>
    %7 = arith.addf %4, %6 : vector<16x64xf32>
    %cst_7 = arith.constant 0.000000e+00 : f32
    %8 = vector.broadcast %cst_7 : f32 to vector<16x64xf32>
    %9 = arith.maximumf %7, %8 : vector<16x64xf32>
    %10 = arith.truncf %9 : vector<16x64xf32> to vector<16x64xbf16>
    %c0_8 = arith.constant 0 : index
    %c0_9 = arith.constant 0 : index
    %11 = vector.load %arg4[%c0_8, %c0_9] : memref<64x32xbf16, #tpu.memory_space<vmem>>, vector<64x32xbf16>
    %cst_10 = arith.constant dense<0.000000e+00> : vector<16x32xf32>
    %12 = tpu.matmul %10, %11, %cst_10 {dimension_numbers = #tpu.dot_dimension_numbers<[1], [0], [0], [1], [0, 0, 1, 1], [], []>} : vector<16x64xbf16>, vector<64x32xbf16>, vector<16x32xf32> -> vector<16x32xf32>
    %c0_11 = arith.constant 0 : index
    %c0_12 = arith.constant 0 : index
    %13 = vector.load %arg5[%c0_11, %c0_12] : memref<1x32xf32, #tpu.memory_space<vmem>>, vector<1x32xf32>
    %14 = vector.broadcast %13 : vector<1x32xf32> to vector<16x32xf32>
    %15 = arith.addf %12, %14 : vector<16x32xf32>
    %16 = arith.addf %15, %0 : vector<16x32xf32>
    %c0_13 = arith.constant 0 : index
    %c0_14 = arith.constant 0 : index
    %17 = vector.load %arg6[%c0_13, %c0_14] : memref<1x32xf32, #tpu.memory_space<vmem>>, vector<1x32xf32>
    %c0_15 = arith.constant 0 : index
    %c0_16 = arith.constant 0 : index
    %18 = vector.load %arg7[%c0_15, %c0_16] : memref<1x32xf32, #tpu.memory_space<vmem>>, vector<1x32xf32>
    %cst_17 = arith.constant dense<0.000000e+00> : vector<16xf32>
    %19 = vector.multi_reduction <add>, %16, %cst_17 [1] : vector<16x32xf32> to vector<16xf32>
    %20 = vector.shape_cast %19 : vector<16xf32> to vector<16x1xf32>
    %cst_18 = arith.constant 3.200000e+01 : f32
    %21 = vector.broadcast %cst_18 : f32 to vector<16x1xf32>
    %22 = arith.divf %20, %21 : vector<16x1xf32>
    %23 = vector.broadcast %22 : vector<16x1xf32> to vector<16x32xf32>
    %24 = arith.subf %16, %23 : vector<16x32xf32>
    %25 = arith.mulf %24, %24 : vector<16x32xf32>
    %cst_19 = arith.constant dense<0.000000e+00> : vector<16xf32>
    %26 = vector.multi_reduction <add>, %25, %cst_19 [1] : vector<16x32xf32> to vector<16xf32>
    %27 = vector.shape_cast %26 : vector<16xf32> to vector<16x1xf32>
    %cst_20 = arith.constant 3.200000e+01 : f32
    %28 = vector.broadcast %cst_20 : f32 to vector<16x1xf32>
    %29 = arith.divf %27, %28 : vector<16x1xf32>
    %cst_21 = arith.constant 9.99999997E-7 : f32
    %30 = vector.broadcast %cst_21 : f32 to vector<16x1xf32>
    %31 = arith.addf %29, %30 : vector<16x1xf32>
    %32 = math.rsqrt %31 : vector<16x1xf32>
    %33 = vector.broadcast %32 : vector<16x1xf32> to vector<16x32xf32>
    %34 = arith.mulf %24, %33 : vector<16x32xf32>
    %35 = vector.broadcast %17 : vector<1x32xf32> to vector<16x32xf32>
    %36 = arith.mulf %34, %35 : vector<16x32xf32>
    %37 = vector.broadcast %18 : vector<1x32xf32> to vector<16x32xf32>
    %38 = arith.addf %36, %37 : vector<16x32xf32>
    %c0_22 = arith.constant 0 : index
    %c0_23 = arith.constant 0 : index
    %39 = vector.load %arg8[%c0_22, %c0_23] : memref<16x32xf32, #tpu.memory_space<vmem>>, vector<16x32xf32>
    tpu.vector_store %arg8[%c0_22, %c0_23], %38 {strides = array<i32>} : memref<16x32xf32, #tpu.memory_space<vmem>>, vector<16x32xf32>,
    return
  }
  func.func @transform_0(%arg0: i32) -> (i32, i32) {
    %c0_i32 = arith.constant 0 : i32
    %c0_i32_0 = arith.constant 0 : i32
    return %arg0, %c0_i32 : i32, i32
  }
  func.func @transform_1(%arg0: i32) -> (i32, i32) {
    %c0_i32 = arith.constant 0 : i32
    %c0_i32_0 = arith.constant 0 : i32
    %c0_i32_1 = arith.constant 0 : i32
    return %c0_i32, %c0_i32_0 : i32, i32
  }
  func.func @transform_2(%arg0: i32) -> (i32, i32) {
    %c0_i32 = arith.constant 0 : i32
    %c0_i32_0 = arith.constant 0 : i32
    %c0_i32_1 = arith.constant 0 : i32
    return %c0_i32, %c0_i32_0 : i32, i32
  }
  func.func @transform_3(%arg0: i32) -> (i32, i32) {
    %c0_i32 = arith.constant 0 : i32
    %c0_i32_0 = arith.constant 0 : i32
    %c0_i32_1 = arith.constant 0 : i32
    return %c0_i32, %c0_i32_0 : i32, i32
  }
  func.func @transform_4(%arg0: i32) -> (i32, i32) {
    %c0_i32 = arith.constant 0 : i32
    %c0_i32_0 = arith.constant 0 : i32
    %c0_i32_1 = arith.constant 0 : i32
    return %c0_i32, %c0_i32_0 : i32, i32
  }
  func.func @transform_5(%arg0: i32) -> (i32, i32) {
    %c0_i32 = arith.constant 0 : i32
    %c0_i32_0 = arith.constant 0 : i32
    %c0_i32_1 = arith.constant 0 : i32
    return %c0_i32, %c0_i32_0 : i32, i32
  }
  func.func @transform_6(%arg0: i32) -> (i32, i32) {
    %c0_i32 = arith.constant 0 : i32
    %c0_i32_0 = arith.constant 0 : i32
    %c0_i32_1 = arith.constant 0 : i32
    return %c0_i32, %c0_i32_0 : i32, i32
  }
  func.func @transform_7(%arg0: i32) -> (i32, i32) {
    %c0_i32 = arith.constant 0 : i32
    %c0_i32_0 = arith.constant 0 : i32
    return %arg0, %c0_i32 : i32, i32
  }
}

</mosaic_0001>

<bundles_post_ra>
// kernel: tpu_custom_call.1
= control target key start
LH: loop header
LB: loop body
LE: loop exit
PB: predicated region body
PF: predicated region fallthrough
CT: control target
= control target key end

     0   :  { %v328_v1 = vmov 0.0   ;;  %vm329_vm0 = vmmov 0   ;;  %vm54_vm1 = vcmask 261120   ;;  %s419_s0 = inlined_call_operand.vmem [shape: f32[16,32], index: 0, kind: input, shape index: {}]   ;;  %s420_s1 = inlined_call_operand.vmem [shape: bf16[32,64], index: 1, kind: input, shape index: {}]   ;;  %s421_s2 = inlined_call_operand.vmem [shape: f32[1,64], index: 2, kind: input, shape index: {}]   ;;  %s422_s3 = inlined_call_operand.vmem [shape: bf16[64,32], index: 3, kind: input, shape index: {}]   ;;  %s423_s4 = inlined_call_operand.vmem [shape: f32[1,32], index: 4, kind: input, shape index: {}]   ;;  %s424_s5 = inlined_call_operand.vmem [shape: f32[1,32], index: 5, kind: input, shape index: {}]   ;;  %s425_s6 = inlined_call_operand.vmem [shape: f32[1,32], index: 6, kind: input, shape index: {}]   ;;  %s426_s7 = inlined_call_operand.hbm [shape: f32[16,32], index: 7, kind: output, shape index: {}]  }
   0x1   :  { %v296_v0 = vld [vmem:[%s420_s1 + $0x8] sm:$0xff]   ;;  %271 = vmatprep.subr.bf16.mxu0 %v328_v1  ;;  %v297_v2 = vld [vmem:[%s420_s1] sm:$0xff]   ;;  %279 = vmatprep.subr.bf16.mxu1 %v328_v1  ;;  %v298_v5 = vld [vmem:[%s422_s3 + $0x18] sm:$0xff]  }
   0x2   :  { %272 = vmatpush3.bf16.msra.mxu0 %v296_v0  ;;  %275 = vmatprep.mubr.msk.bf16.mxu0 %vm329_vm0, %v328_v1  ;;  %v28_v3 = vld [vmem:[%s419_s0] sm:$0xff]  ;;  %v29_v4 = vld [vmem:[%s419_s0 + $0x8] sm:$0xff] }
   0x3   :  { %273 = vmatprep.subr.bf16.mxu0 %v328_v1  ;;  %287 = vmatprep.mubr.msk.bf16.mxu1 %vm329_vm0, %v328_v1  ;;  %v30_v6 = vpack.c.bf16 %v29_v4, %v28_v3 }
   0x4   :  { %280 = vmatpush3.bf16.msra.mxu1 %v298_v5 }
   0x5   :  { %281 = vmatprep.subr.bf16.mxu1 %v328_v1 }
   0x6   :  { %274 = vmatpush3.bf16.msra.mxu0 %v297_v2 }
   0x7   :  { %12 = vsyncpa [#allocation3], 0  ;;  %v299_v7 = vld [vmem:[%s422_s3 + $0x10] sm:$0xff]   ;;  %v300_v8 = vld [vmem:[%s422_s3 + $0x8] sm:$0xff]   ;;  %vm141_vm2 = vcmask 523264   ;;  %s330_s20 = smov [#allocation2]  }
   0x8   :  { %282 = vmatpush3.bf16.msra.mxu1 %v299_v7  ;;  %v301_v9 = vld [vmem:[%s422_s3] sm:$0xff]   ;;  %s240_s21 = sshll.u32 %s330_s20, 4  ;;  %s241_s21 = int_to_ptr.vmem [resolvable:$true] %s240_s21 }
   0x9   :  { %276 = vmatmul.mubr.msk.bf16.vlgmr.msra.gmra.mxu0 %vm54_vm1, %v30_v6  ;;  %283 = vmatprep.subr.bf16.mxu1 %v328_v1  ;;  %v251_v10 = vld [vmem:[%s421_s2] ss:$0 sm:$0xff]  ;;  %s306_s22 = scalar_lea.vmem %s241_s21, 256  ;;  %p311_p1 = scmp.lt.s32.totalorder %s241_s21, %s241_s21 }
   0xa   :  { %v255_v20 = vld [vmem:[%s423_s4] ss:$0 sm:$0xff]  ;;  %p307_p0 = scmp.ne.s32.totalorder %s241_s21, %s306_s22  ;;  %p312_p2 = scmp.lt.s32.totalorder %s306_s22, %s306_s22 }
   0xb   :  { %v261_v48 = vld [vmem:[%s424_s5] ss:$0 sm:$0xff] }
   0xc   :  { %284 = vmatpush3.bf16.msra.mxu1 %v300_v8  ;;  %v262_v50 = vld [vmem:[%s425_s6] ss:$0 sm:$0xff]  ;;  %p313_p3 = por %p312_p2, %p311_p1 }
   0xd   :  { %285 = vmatprep.subr.bf16.mxu1 %v328_v1 }
   0xe   :  { %p314_p4 = pnand %p313_p3, %p307_p0 }
  0x10   :  { %286 = vmatpush3.bf16.msra.mxu1 %v301_v9 }
  0xc9   :  { %v92_v11 = vpop.f32.mrf.mxu0 }
  0xca   :  { %v93_v13 = vadd.f32 %v251_v10, %v92_v11 }
  0xcb   :  { %v277_v12 = vpop.f32.mrf.mxu0 }
  0xcc   :  { %v99_v17 = vmax.f32 %v93_v13, 0.0 }
  0xcd   :  { %v95_v14 = vpop.f32.mrf.mxu0 }
  0xce   :  { %v96_v15 = vadd.f32 %v251_v10, %v95_v14 }
  0xcf   :  { %v278_v16 = vpop.f32.mrf.mxu0 }
  0xd0   :  { %v100_v18 = vmax.f32 %v96_v15, 0.0 }
  0xd2   :  { %v101_v19 = vpack.c.bf16 %v100_v18, %v99_v17 }
  0xd4   :  { %288 = vmatmul.mubr.msk.bf16.vlgmr.msra.gmra.mxu1 %vm141_vm2, %v101_v19 }
 0x194   :  { %v179_v21 = vpop.f32.mrf.mxu1 }
 0x195   :  { %v180_v22 = vadd.f32 %v255_v20, %v179_v21 }
 0x196   :  { %v289_v23 = vpop.f32.mrf.mxu1 }
 0x197   :  { %v186_v24 = vadd.f32 %v180_v22, %v28_v3 }
 0x198   :  { %v182_v25 = vpop.f32.mrf.mxu1 }
 0x199   :  { %v183_v26 = vadd.f32 %v255_v20, %v182_v25  ;;  %v190_v27 = vsel %vm54_vm1, %v186_v24, 0.0 }
 0x19a   :  { %191 = vadd.xlane.f32.xlu0 %v190_v27  ;;  %v290_v28 = vpop.f32.mrf.mxu1 }
 0x19b   :  { %v187_v29 = vadd.f32 %v183_v26, %v29_v4 }
 0x19d   :  { %v193_v30 = vsel %vm54_vm1, %v187_v29, 0.0 }
 0x19e   :  { %194 = vadd.xlane.f32.xlu0 %v193_v30 }
 0x223   :  { %v192_v31 = vpop.xlane.xlu0 %191 }
 0x224   :  { %v197_v32 = vmul.f32 0.03125, %v192_v31 }
 0x226   :  { %v199_v33 = vsub.f32 %v186_v24, %v197_v32 }
 0x227   :  { %v195_v34 = vpop.xlane.xlu0 %194 }
 0x228   :  { %v198_v35 = vmul.f32 0.03125, %v195_v34  ;;  %v201_v36 = vmul.f32 %v199_v33, %v199_v33 }
 0x22a   :  { %v200_v37 = vsub.f32 %v187_v29, %v198_v35  ;;  %v203_v38 = vsel %vm54_vm1, %v201_v36, 0.0 }
 0x22b   :  { %204 = vadd.xlane.f32.xlu1 %v203_v38 }
 0x22c   :  { %v202_v39 = vmul.f32 %v200_v37, %v200_v37 }
 0x22e   :  { %v206_v40 = vsel %vm54_vm1, %v202_v39, 0.0 }
 0x22f   :  { %207 = vadd.xlane.f32.xlu1 %v206_v40 }
 0x2b4   :  { %v205_v41 = vpop.xlane.xlu1 %204 }
 0x2b5   :  { %v209_v42 = vmul.f32 0.03125, %v205_v41 }
 0x2b7   :  { %v211_v43 = vadd.f32 1e-06, %v209_v42 }
 0x2b8   :  { %v208_v44 = vpop.xlane.xlu1 %207 }
 0x2b9   :  { %302 = vrsqrt.f32 %v211_v43  ;;  %v210_v45 = vmul.f32 0.03125, %v208_v44 }
 0x2bb   :  { %v212_v46 = vadd.f32 1e-06, %v210_v45 }
 0x2bd   :  { %304 = vrsqrt.f32 %v212_v46 }
 0x2c6   :  { %v303_v47 = vpop.eup %302 }
 0x2c7   :  { %v215_v49 = vmul.f32 %v303_v47, %v199_v33 }
 0x2c9   :  { %v223_v51 = vmul.f32 %v261_v48, %v215_v49 }
 0x2ca   :  { %v305_v52 = vpop.eup %304 }
 0x2cb   :  { %v216_v53 = vmul.f32 %v305_v52, %v200_v37  ;;  %v231_v54 = vadd.f32 %v262_v50, %v223_v51 }
 0x2cd   :  { %v224_v55 = vmul.f32 %v261_v48, %v216_v53  ;;  %233 = vst.msk [vmem:[#allocation2] sm:$0xff] %vm54_vm1, %v231_v54 }
 0x2cf   :  { %v232_v56 = vadd.f32 %v262_v50, %v224_v55 }
 0x2d1   :  { %234 = vst.msk [vmem:[#allocation2 + $0x8] sm:$0xff] %vm54_vm1, %v232_v56 }
 0x2d2   :  { %317 = shalt.err (!%p314_p4)
}
 0x2d3   :  { %s331_s5 = smov 128   ;;  %s332_s6 = smov 8  }
 0x2d4   :  { %246 = dma.vmem_to_hbm [thread:$0]  %s241_s21, 256, %s426_s7, [#allocation3], %s331_s5, %s331_s5, %s332_s6  }
 0x2d5   :  { %326 = dma.done.wait [#allocation3], 256  }
 0x2d6   :  { %327 = vsyncadd [#allocation3], 4294967040 }
 0x2d7   :  { %250 = vsyncpa [#allocation3], 1 }

</bundles_post_ra>
